<compile_context>
chip_gen: v7x
topology: tpu7x:2x2x1
jax: 0.10.0
libtpu: 0.0.40
codegen_flags: <defaults>
</compile_context>

<pallas_src>
import functools

import jax
import jax.numpy as jnp
from jax.experimental import pallas as pl
from jax.experimental.pallas import tpu as pltpu

_LANE = 128      # lane width: last block dim must be a multiple of this (or full dim)
_SUBLANE = 8     # sublane width: second-to-last block dim multiple (or full dim)

_RESIDENT_BUDGET = 40 * 1024 * 1024   # budget for the weight-resident decision
_VMEM_SOFT_CAP = 48 * 1024 * 1024     # never request more (v7x: 64 MiB physical/TC)
_TILE_VMEM_BUDGET = 16 * 1024 * 1024  # budget for double-buffered x/out tiles


def _cdiv(a, b):
    return -(-a // b)


def _round_up(x, m):
    return ((x + m - 1) // m) * m


def _pick_tile(dim_pad, preferred):
    """Largest tile <= preferred that divides dim_pad (dim_pad multiple of 128)."""
    t = min(preferred, dim_pad)
    while dim_pad % t != 0:
        t -= _LANE
    return max(t, _LANE)


def _resident_fits(F, C, w_itemsize):
    """Can W.T + bias + minimal double-buffered x/out tiles live in VMEM?"""
    weight = F * C * w_itemsize
    bias = C * 4
    min_tiles = 2 * _SUBLANE * (F + C) * 4   # tm=8, f32 x and out, double-buffered
    return weight + bias + min_tiles <= _RESIDENT_BUDGET


# ----------------------------------------------------------------------------
# Kernels
# ----------------------------------------------------------------------------
def _linear_kernel_single(x_ref, wt_ref, b_ref, o_ref, *, compute_dtype):
    """One output tile, full reduction in one dot (resident / single-K-block path)."""
    acc = jnp.dot(x_ref[...].astype(compute_dtype), wt_ref[...],
                  preferred_element_type=jnp.float32)
    o_ref[...] = (acc + b_ref[...].astype(jnp.float32)).astype(o_ref.dtype)


def _linear_kernel_acc(x_ref, wt_ref, b_ref, o_ref, acc_ref, *, compute_dtype):
    """Tiled-K path: K (reduction) is the last grid axis, f32 VMEM accumulator."""
    k = pl.program_id(2)

    @pl.when(k == 0)
    def _init():
        acc_ref[...] = jnp.zeros_like(acc_ref)

    acc_ref[...] += jnp.dot(x_ref[...].astype(compute_dtype), wt_ref[...],
                            preferred_element_type=jnp.float32)

    @pl.when(k == pl.num_programs(2) - 1)
    def _finalize():
        # Bias added once per output tile, in f32, then a single store.
        o_ref[...] = (acc_ref[...] + b_ref[...].astype(jnp.float32)).astype(o_ref.dtype)


# ----------------------------------------------------------------------------
# Parameter packing (one-time, outside the hot path)
# ----------------------------------------------------------------------------
def pack_linear_params(w, b, *, compute_dtype=jnp.bfloat16):
    """Pack nn.Linear params once.

    w: (C, F) PyTorch Linear weight layout; b: (C,).

    Resident (classifier-head) case: returns the UNPADDED transposed weight
    (F, C) in `compute_dtype` (bf16 halves HBM/DMA bytes and unlocks the
    v6e/v7x MXU bf16 rate) plus a (1, C) f32 bias. Full-array block shapes are
    exempt from the (8,128) rule, so no padding/slicing is ever needed.

    Oversized weights are transposed + lane-padded for the tiled fallback.
    """
    C, F = w.shape
    wt = w.T.astype(compute_dtype)
    b2 = jnp.asarray(b, jnp.float32).reshape(1, C)
    if _resident_fits(F, C, jnp.dtype(compute_dtype).itemsize):
        return wt, b2
    F_pad = _round_up(F, _LANE)
    C_pad = _round_up(C, _LANE)
    wt_pad = jnp.zeros((F_pad, C_pad), compute_dtype).at[:F, :C].set(wt)
    b_pad = jnp.zeros((1, C_pad), jnp.float32).at[:, :C].set(b2)
    return wt_pad, b_pad


# ----------------------------------------------------------------------------
# Forward wrappers
# ----------------------------------------------------------------------------
def _pick_tm(B, per_row_bytes):
    """Batch tile: multiple of 8 (or == B), fits VMEM budget, >=2 grid steps
    when the batch allows so both v7x TensorCores get work."""
    if B <= _SUBLANE:
        return B
    cap = max(_SUBLANE, (_TILE_VMEM_BUDGET // max(per_row_bytes, 1))
              // _SUBLANE * _SUBLANE)
    tm = min(512, cap, _round_up(B, _SUBLANE))
    if _cdiv(B, tm) < 2:
        tm = max(_SUBLANE, _round_up(_cdiv(B, 2), _SUBLANE))
    return tm


def _forward_resident(x, wt, b):
    """Weight lives in VMEM for the whole grid; only x tiles are streamed."""
    B, F = x.shape
    _, C = wt.shape
    xbytes = jnp.dtype(x.dtype).itemsize
    wbytes = jnp.dtype(wt.dtype).itemsize

    tm = _pick_tm(B, 2 * (F + C) * xbytes)   # double-buffered x + out rows
    grid_m = _cdiv(B, tm)

    need = (F * C * wbytes + C * 4 + 2 * tm * (F + C) * xbytes)
    vmem_limit = int(min(_VMEM_SOFT_CAP, max(need + (4 << 20), 16 << 20)))

    kernel = functools.partial(_linear_kernel_single, compute_dtype=wt.dtype)
    return pl.pallas_call(
        kernel,
        out_shape=jax.ShapeDtypeStruct((B, C), x.dtype),
        grid_spec=pltpu.PrefetchScalarGridSpec(
            num_scalar_prefetch=0,
            grid=(grid_m,),
            in_specs=[
                pl.BlockSpec((tm, F), lambda i: (i, 0)),   # x: the only streamed operand
                pl.BlockSpec((F, C), lambda i: (0, 0)),    # W.T: constant index -> fetched once
                pl.BlockSpec((1, C), lambda i: (0, 0)),    # bias: resident
            ],
            out_specs=pl.BlockSpec((tm, C), lambda i: (i, 0)),
        ),
        compiler_params=pltpu.CompilerParams(
            dimension_semantics=("parallel",),             # megacore-shard the M axis
            vmem_limit_bytes=vmem_limit,
        ),
    )(x, wt, b)


def _forward_tiled(x, wt_pad, b_pad):
    """Fallback for weights too large to keep resident: 3-D (M, N, K) grid."""
    B, F = x.shape
    F_pad, C_pad = wt_pad.shape
    xbytes = jnp.dtype(x.dtype).itemsize
    wbytes = jnp.dtype(wt_pad.dtype).itemsize

    # Explicit zero pad on the K axis only (garbage K-tail values must never
    # enter the dot); the batch axis uses partial blocks (no wrapper copy).
    if F_pad != F:
        x = jnp.pad(x, ((0, 0), (0, F_pad - F)))

    tn = _pick_tile(C_pad, 512)
    tk = _pick_tile(F_pad, 2048)
    tm = _pick_tm(B, 2 * (tk + tn) * xbytes)
    kt = F_pad // tk

    need = (2 * (tm * tk * xbytes + tk * tn * wbytes + tm * tn * xbytes)
            + tm * tn * 4 + tn * 4)
    vmem_limit = int(min(_VMEM_SOFT_CAP, max(need + (4 << 20), 16 << 20)))

    if kt == 1:
        # Single K block: no accumulator scratch, no pl.when init/finalize.
        kernel = functools.partial(_linear_kernel_single, compute_dtype=wt_pad.dtype)
        grid = (_cdiv(B, tm), C_pad // tn)
        in_specs = [
            pl.BlockSpec((tm, tk), lambda i, j: (i, 0)),
            pl.BlockSpec((tk, tn), lambda i, j: (0, j)),
            pl.BlockSpec((1, tn), lambda i, j: (0, j)),
        ]
        out_spec = pl.BlockSpec((tm, tn), lambda i, j: (i, j))
        scratch = []
        dims = ("parallel", "parallel")
    else:
        kernel = functools.partial(_linear_kernel_acc, compute_dtype=wt_pad.dtype)
        grid = (_cdiv(B, tm), C_pad // tn, kt)
        in_specs = [
            pl.BlockSpec((tm, tk), lambda i, j, k: (i, k)),
            # NOTE: on v5e, if profiling shows exposed DMA on long K, consider
            # pipeline_mode=pl.Buffered(3) on this weight spec.
            pl.BlockSpec((tk, tn), lambda i, j, k: (k, j)),
            pl.BlockSpec((1, tn), lambda i, j, k: (0, j)),
        ]
        out_spec = pl.BlockSpec((tm, tn), lambda i, j, k: (i, j))
        scratch = [pltpu.VMEM((tm, tn), jnp.float32)]
        dims = ("parallel", "parallel", "arbitrary")

    return pl.pallas_call(
        kernel,
        out_shape=jax.ShapeDtypeStruct((B, C_pad), x.dtype),
        grid_spec=pltpu.PrefetchScalarGridSpec(
            num_scalar_prefetch=0,
            grid=grid,
            in_specs=in_specs,
            out_specs=out_spec,
            scratch_shapes=scratch,
        ),
        compiler_params=pltpu.CompilerParams(
            dimension_semantics=dims,
            vmem_limit_bytes=vmem_limit,
        ),
    )(x, wt_pad, b_pad)


@functools.partial(jax.jit, static_argnames=("n_classes",))
def calnet_forward(x, wt, b, *, n_classes):
    """CalNet.forward: only the `mlp` branch runs -> y = x @ W.T + b.

    x : (B, F) activations (f32 or bf16)
    wt: pre-packed W.T from pack_linear_params (bf16; unpadded or lane-padded)
    b : pre-packed bias (1, C) f32
    returns (B, n_classes)
    """
    _, F = x.shape
    Fw, Cw = wt.shape
    if _resident_fits(Fw, Cw, jnp.dtype(wt.dtype).itemsize) and Fw == F:
        out = _forward_resident(x, wt, b)
    else:
        out = _forward_tiled(x, wt, b)
    return out if out.shape[1] == n_classes else out[:, :n_classes]


# ----------------------------------------------------------------------------
# Parameter init (mirrors PyTorch defaults; densenet params created for parity
# with __init__ but never used in forward(), matching the reference module).
# ----------------------------------------------------------------------------
def init_calnet_params(key, in_features, n_classes):
    keys = jax.random.split(key, 10)

    def lin(kw, kb, fan_in, fan_out):
        bound = 1.0 / jnp.sqrt(jnp.float32(fan_in))
        w = jax.random.uniform(kw, (fan_out, fan_in), jnp.float32, -bound, bound)
        b = jax.random.uniform(kb, (fan_out,), jnp.float32, -bound, bound)
        return w, b

    params = {}
    params["dense1"] = lin(keys[0], keys[1], in_features, 64)   # unused in forward
    params["dense2"] = lin(keys[2], keys[3], 64, 32)            # unused in forward
    params["dense3"] = lin(keys[4], keys[5], 32, n_classes)     # unused in forward
    params["mlp"] = lin(keys[6], keys[7], in_features, n_classes)
    return params


if __name__ == "__main__":
    key = jax.random.PRNGKey(0)
    in_features = 32
    n_classes = 16
    batch = 8

    params = init_calnet_params(key, in_features, n_classes)
    x = jax.random.normal(jax.random.fold_in(key, 123),
                          (batch, in_features), jnp.float32)

    w_mlp, b_mlp = params["mlp"]
    # One-time packing (transpose + bf16 cast) outside the hot path.
    wt, bb = pack_linear_params(w_mlp, b_mlp)

    y = calnet_forward(x, wt, bb, n_classes=n_classes)
    y = jax.block_until_ready(y)

    # Reference (f32 math, same semantics as torch nn.Linear). bf16 operands in
    # the kernel -> loosen the tolerance; accumulation and bias-add stay in f32.
    y_ref = x @ w_mlp.T + b_mlp
    assert y.shape == (batch, n_classes)
    assert jnp.allclose(y, y_ref, atol=3e-2, rtol=3e-2), \
        float(jnp.max(jnp.abs(y - y_ref)))

    print("KERNEL_OK")
</pallas_src>

<mosaic_0001>
module attributes {stable_mosaic.version = 11 : i64} {
  func.func @_linear_kernel_single(%arg0: i32, %arg1: memref<8x32xf32, #tpu.memory_space<vmem>>, %arg2: memref<32x16xbf16, #tpu.memory_space<vmem>>, %arg3: memref<1x16xf32, #tpu.memory_space<vmem>>, %arg4: memref<8x16xf32, #tpu.memory_space<vmem>>) attributes {dimension_semantics = [#tpu.dimension_semantics<parallel>], iteration_bounds = array<i64: 1>, scalar_prefetch = 0 : i64, scratch_operands = 0 : i64, tpu.core_type = #tpu.core_type<tc>, window_params = [{transform_indices = @transform_0, window_bounds = array<i64: 8, 32>}, {pipeline_mode = #tpu.pipeline_mode<synchronous>, transform_indices = @transform_1, window_bounds = array<i64: 32, 16>}, {pipeline_mode = #tpu.pipeline_mode<synchronous>, transform_indices = @transform_2, window_bounds = array<i64: 1, 16>}, {transform_indices = @transform_3, window_bounds = array<i64: 8, 16>}]} {
    %c0 = arith.constant 0 : index
    %c0_0 = arith.constant 0 : index
    %0 = vector.load %arg1[%c0, %c0_0] : memref<8x32xf32, #tpu.memory_space<vmem>>, vector<8x32xf32>
    %1 = arith.truncf %0 : vector<8x32xf32> to vector<8x32xbf16>
    %c0_1 = arith.constant 0 : index
    %c0_2 = arith.constant 0 : index
    %2 = vector.load %arg2[%c0_1, %c0_2] : memref<32x16xbf16, #tpu.memory_space<vmem>>, vector<32x16xbf16>
    %cst = arith.constant dense<0.000000e+00> : vector<8x16xf32>
    %3 = tpu.matmul %1, %2, %cst {dimension_numbers = #tpu.dot_dimension_numbers<[1], [0], [0], [1], [0, 0, 1, 1], [], []>} : vector<8x32xbf16>, vector<32x16xbf16>, vector<8x16xf32> -> vector<8x16xf32>
    %c0_3 = arith.constant 0 : index
    %c0_4 = arith.constant 0 : index
    %4 = vector.load %arg3[%c0_3, %c0_4] : memref<1x16xf32, #tpu.memory_space<vmem>>, vector<1x16xf32>
    %5 = vector.broadcast %4 : vector<1x16xf32> to vector<8x16xf32>
    %6 = arith.addf %3, %5 : vector<8x16xf32>
    %c0_5 = arith.constant 0 : index
    %c0_6 = arith.constant 0 : index
    %7 = vector.load %arg4[%c0_5, %c0_6] : memref<8x16xf32, #tpu.memory_space<vmem>>, vector<8x16xf32>
    tpu.vector_store %arg4[%c0_5, %c0_6], %6 {strides = array<i32>} : memref<8x16xf32, #tpu.memory_space<vmem>>, vector<8x16xf32>,
    return
  }
  func.func @transform_0(%arg0: i32) -> (i32, i32) {
    %c0_i32 = arith.constant 0 : i32
    %c0_i32_0 = arith.constant 0 : i32
    return %arg0, %c0_i32 : i32, i32
  }
  func.func @transform_1(%arg0: i32) -> (i32, i32) {
    %c0_i32 = arith.constant 0 : i32
    %c0_i32_0 = arith.constant 0 : i32
    %c0_i32_1 = arith.constant 0 : i32
    return %c0_i32, %c0_i32_0 : i32, i32
  }
  func.func @transform_2(%arg0: i32) -> (i32, i32) {
    %c0_i32 = arith.constant 0 : i32
    %c0_i32_0 = arith.constant 0 : i32
    %c0_i32_1 = arith.constant 0 : i32
    return %c0_i32, %c0_i32_0 : i32, i32
  }
  func.func @transform_3(%arg0: i32) -> (i32, i32) {
    %c0_i32 = arith.constant 0 : i32
    %c0_i32_0 = arith.constant 0 : i32
    return %arg0, %c0_i32 : i32, i32
  }
}

</mosaic_0001>

<bundles_post_ra>
// kernel: calnet_forward.1
= control target key start
LH: loop header
LB: loop body
LE: loop exit
PB: predicated region body
PF: predicated region fallthrough
CT: control target
= control target key end

     0   :  { %v145_v1 = vmov 0.0   ;;  %vm146_vm0 = vmmov 0   ;;  %s192_s0 = inlined_call_operand.vmem [shape: f32[8,32], index: 0, kind: input, shape index: {}]   ;;  %s193_s1 = inlined_call_operand.vmem [shape: bf16[32,16], index: 1, kind: input, shape index: {}]   ;;  %s194_s2 = inlined_call_operand.vmem [shape: f32[1,16], index: 2, kind: input, shape index: {}]   ;;  %s195_s3 = inlined_call_operand.hbm [shape: f32[8,16], index: 3, kind: output, shape index: {}]  }
   0x1   :  { %v119_v0 = vld [vmem:[%s193_s1] sm:$0xff]   ;;  %108 = vmatprep.subr.bf16.mxu0 %v145_v1  ;;  %v120_v2 = vld [vmem:[%s193_s1 + $0x8] sm:$0xff]   ;;  %112 = vmatprep.mubr.msk.bf16.mxu0 %vm146_vm0, %v145_v1 }
   0x2   :  { %109 = vmatpush3.bf16.msra.mxu0 %v119_v0  ;;  %v16_v3 = vld [vmem:[%s192_s0] sm:$0xff] }
   0x3   :  { %8 = vsyncpa [#allocation3], 0  ;;  %110 = vmatprep.subr.bf16.mxu0 %v145_v1  ;;  %v17_v4 = vpack.c.bf16 %v16_v3, %v16_v3  ;;  %vm41_vm1 = vcmask 261120   ;;  %v101_v5 = vld [vmem:[%s194_s2] ss:$0 sm:$0xff]  ;;  %s147_s20 = smov [#allocation2]  }
   0x4   :  { %s93_s21 = sshll.u32 %s147_s20, 4  ;;  %vm85_vm2 = vcmask 130048   ;;  %s94_s21 = int_to_ptr.vmem [resolvable:$true] %s93_s21 }
   0x5   :  { %s121_s0 = scalar_lea.vmem %s94_s21, 128  ;;  %p126_p1 = scmp.lt.s32.totalorder %s94_s21, %s94_s21 }
   0x6   :  { %111 = vmatpush3.bf16.msra.mxu0 %v120_v2  ;;  %p122_p0 = scmp.ne.s32.totalorder %s94_s21, %s121_s0  ;;  %p127_p2 = scmp.lt.s32.totalorder %s121_s0, %s121_s0 }
   0x8   :  { %p128_p3 = por %p127_p2, %p126_p1 }
   0x9   :  { %113 = vmatmul.mubr.msk.bf16.vlgmr.msra.gmra.mrb[0].mxu0 %vm41_vm1, %v17_v4 }
   0xa   :  { %p129_p4 = pnand %p128_p3, %p122_p0 }
  0xdc   :  { %v79_v6 = vpop.f32.mrb[0].mxu0 }
  0xdd   :  { %v80_v7 = vadd.f32 %v101_v5, %v79_v6  ;;  %v114_v8 = vpop.f32.mrb[1].mxu0 }
  0xde   :  { %v82_v9 = vpop.f32.mrb[2].mxu0 }
  0xdf   :  { %v115_v10 = vpop.f32.mrb[3].mxu0  ;;  %86 = vst.msk [vmem:[#allocation2] sm:$0xff] %vm85_vm2, %v80_v7 }
  0xe0   :  { %132 = shalt.err (!%p129_p4)
}
  0xe1   :  { %s133_s2 = scalar_lea.hbm %s195_s3, 128 }
  0xe2   :  { %p134_p5 = scmp.ne.s32.totalorder %s195_s3, %s133_s2  ;;  %p137_p6 = scmp.lt.u32.totalorder %s133_s2, %s195_s3 }
  0xe4   :  { %p139_p7 = pnand %p137_p6, %p134_p5 }
  0xe6   :  { %142 = shalt.err (!%p139_p7)
}
  0xe7   :  { %96 = dma.vmem_to_hbm [thread:$0]  %s94_s21, 128, %s195_s3, [#allocation3]  }
  0xe8   :  { %143 = dma.done.wait [#allocation3], 128  }
  0xe9   :  { %144 = vsyncadd [#allocation3], 4294967168 }
  0xea   :  { %100 = vsyncpa [#allocation3], 1 }

</bundles_post_ra>
